<compile_context>
chip_gen: v5e
topology: v5e:2x2
jax: 0.10.0
libtpu: 0.0.40
codegen_flags: <defaults>
</compile_context>

<pallas_src>
import jax
import jax.numpy as jnp
from jax.experimental import pallas as pl
from jax.experimental.pallas import tpu as pltpu


def _mlp(x, w1, b1, w2, b2, mxu_dtype):
    """2-layer MLP: bf16 (or f32) MXU operands, f32 accumulation + elementwise."""
    h = jnp.dot(x.astype(mxu_dtype), w1.astype(mxu_dtype),
                preferred_element_type=jnp.float32)
    h = jnp.maximum(h + b1, 0.0)                       # f32 bias + ReLU on VPU
    o = jnp.dot(h.astype(mxu_dtype), w2.astype(mxu_dtype),
                preferred_element_type=jnp.float32)
    return o + b2


def _make_triplet_kernel(mxu_dtype):
    def kernel(x1_ref, x2_ref, x3_ref, w1_ref, b1_ref, w2_ref, b2_ref,
               o1_ref, o2_ref, o3_ref):
        B = x1_ref.shape[0]
        # Stack the three batches in VMEM -> (3B, D): one tall matmul per layer
        # (weights are shared), instead of three small MXU passes.
        x = jnp.concatenate([x1_ref[...], x2_ref[...], x3_ref[...]], axis=0)
        o = _mlp(x, w1_ref[...], b1_ref[...], w2_ref[...], b2_ref[...], mxu_dtype)
        o1_ref[...] = o[0 * B:1 * B].astype(o1_ref.dtype)
        o2_ref[...] = o[1 * B:2 * B].astype(o2_ref.dtype)
        o3_ref[...] = o[2 * B:3 * B].astype(o3_ref.dtype)
    return kernel


def _make_embed_kernel(mxu_dtype):
    def kernel(x_ref, w1_ref, b1_ref, w2_ref, b2_ref, o_ref):
        o = _mlp(x_ref[...], w1_ref[...], b1_ref[...], w2_ref[...], b2_ref[...],
                 mxu_dtype)
        o_ref[...] = o.astype(o_ref.dtype)
    return kernel


def _full_spec(shape):
    # Full-array block, same block every (single) grid step.
    return pl.BlockSpec(shape, lambda i: (0,) * len(shape))


def triplet_net_forward(x1, x2, x3, params, *, mxu_dtype=jnp.bfloat16):
    """Pallas TripletNet.forward: (emb1, emb2, emb3) with shared weights."""
    w1, b1, w2, b2 = params
    B, D = x1.shape
    H = w1.shape[1]
    E = w2.shape[1]

    out_sds = jax.ShapeDtypeStruct((B, E), jnp.float32)

    return pl.pallas_call(
        _make_triplet_kernel(mxu_dtype),
        out_shape=(out_sds, out_sds, out_sds),
        grid=(1,),
        in_specs=[
            _full_spec((B, D)), _full_spec((B, D)), _full_spec((B, D)),  # x1,x2,x3
            _full_spec((D, H)), _full_spec((1, H)),                      # w1, b1
            _full_spec((H, E)), _full_spec((1, E)),                      # w2, b2
        ],
        out_specs=(_full_spec((B, E)), _full_spec((B, E)), _full_spec((B, E))),
        compiler_params=pltpu.CompilerParams(
            dimension_semantics=("arbitrary",),
        ),
    )(x1, x2, x3, w1, b1, w2, b2)


def get_embedding(x, params, *, mxu_dtype=jnp.bfloat16):
    """Pallas TripletNet.get_embedding: dedicated single-input path (no 3x work)."""
    w1, b1, w2, b2 = params
    B, D = x.shape
    H = w1.shape[1]
    E = w2.shape[1]

    return pl.pallas_call(
        _make_embed_kernel(mxu_dtype),
        out_shape=jax.ShapeDtypeStruct((B, E), jnp.float32),
        grid=(1,),
        in_specs=[
            _full_spec((B, D)),
            _full_spec((D, H)), _full_spec((1, H)),
            _full_spec((H, E)), _full_spec((1, E)),
        ],
        out_specs=_full_spec((B, E)),
        compiler_params=pltpu.CompilerParams(
            dimension_semantics=("arbitrary",),
        ),
    )(x, w1, b1, w2, b2)


def init_params(key, D, H, E):
    k1, k2, k3, k4 = jax.random.split(key, 4)
    w1 = jax.random.normal(k1, (D, H), jnp.float32) * (1.0 / jnp.sqrt(D))
    b1 = jax.random.normal(k2, (1, H), jnp.float32) * 0.01
    w2 = jax.random.normal(k3, (H, E), jnp.float32) * (1.0 / jnp.sqrt(H))
    b2 = jax.random.normal(k4, (1, E), jnp.float32) * 0.01
    return w1, b1, w2, b2


def _reference(x, params, mxu_dtype=jnp.bfloat16):
    """Pure-JAX reference with the same bf16 MXU-operand / f32-accum recipe."""
    w1, b1, w2, b2 = params
    h = jnp.dot(x.astype(mxu_dtype), w1.astype(mxu_dtype),
                preferred_element_type=jnp.float32)
    h = jnp.maximum(h + b1, 0.0)
    o = jnp.dot(h.astype(mxu_dtype), w2.astype(mxu_dtype),
                preferred_element_type=jnp.float32)
    return o + b2


if __name__ == "__main__":
    # Small shapes; H = E = 128 keeps hidden/output stores lane-dense, B = 8
    # keeps the batch sublane-aligned for f32.
    B, D, H, E = 8, 32, 128, 128
    key = jax.random.PRNGKey(0)
    kx1, kx2, kx3, kp = jax.random.split(key, 4)

    x1 = jax.random.normal(kx1, (B, D), jnp.float32)
    x2 = jax.random.normal(kx2, (B, D), jnp.float32)
    x3 = jax.random.normal(kx3, (B, D), jnp.float32)
    params = init_params(kp, D, H, E)

    o1, o2, o3 = triplet_net_forward(x1, x2, x3, params)
    e1 = get_embedding(x1, params)
    jax.block_until_ready((o1, o2, o3, e1))

    # Correctness check vs pure-JAX reference (same bf16-operand recipe).
    for x, o in ((x1, o1), (x2, o2), (x3, o3), (x1, e1)):
        ref = _reference(x, params)
        assert jnp.allclose(o, ref, atol=1e-2, rtol=1e-2), "mismatch vs reference"

    print("KERNEL_OK")
</pallas_src>

<mosaic_0001>
module attributes {stable_mosaic.version = 11 : i64} {
  func.func @kernel(%arg0: i32, %arg1: memref<8x32xf32, #tpu.memory_space<vmem>>, %arg2: memref<8x32xf32, #tpu.memory_space<vmem>>, %arg3: memref<8x32xf32, #tpu.memory_space<vmem>>, %arg4: memref<32x128xf32, #tpu.memory_space<vmem>>, %arg5: memref<1x128xf32, #tpu.memory_space<vmem>>, %arg6: memref<128x128xf32, #tpu.memory_space<vmem>>, %arg7: memref<1x128xf32, #tpu.memory_space<vmem>>, %arg8: memref<8x128xf32, #tpu.memory_space<vmem>>, %arg9: memref<8x128xf32, #tpu.memory_space<vmem>>, %arg10: memref<8x128xf32, #tpu.memory_space<vmem>>) attributes {dimension_semantics = [#tpu.dimension_semantics<arbitrary>], iteration_bounds = array<i64: 1>, scalar_prefetch = 0 : i64, scratch_operands = 0 : i64, tpu.core_type = #tpu.core_type<tc>, window_params = [{pipeline_mode = #tpu.pipeline_mode<synchronous>, transform_indices = @transform_0, window_bounds = array<i64: 8, 32>}, {pipeline_mode = #tpu.pipeline_mode<synchronous>, transform_indices = @transform_1, window_bounds = array<i64: 8, 32>}, {pipeline_mode = #tpu.pipeline_mode<synchronous>, transform_indices = @transform_2, window_bounds = array<i64: 8, 32>}, {pipeline_mode = #tpu.pipeline_mode<synchronous>, transform_indices = @transform_3, window_bounds = array<i64: 32, 128>}, {pipeline_mode = #tpu.pipeline_mode<synchronous>, transform_indices = @transform_4, window_bounds = array<i64: 1, 128>}, {pipeline_mode = #tpu.pipeline_mode<synchronous>, transform_indices = @transform_5, window_bounds = array<i64: 128, 128>}, {pipeline_mode = #tpu.pipeline_mode<synchronous>, transform_indices = @transform_6, window_bounds = array<i64: 1, 128>}, {pipeline_mode = #tpu.pipeline_mode<synchronous>, transform_indices = @transform_7, window_bounds = array<i64: 8, 128>}, {pipeline_mode = #tpu.pipeline_mode<synchronous>, transform_indices = @transform_8, window_bounds = array<i64: 8, 128>}, {pipeline_mode = #tpu.pipeline_mode<synchronous>, transform_indices = @transform_9, window_bounds = array<i64: 8, 128>}]} {
    %c0 = arith.constant 0 : index
    %c0_0 = arith.constant 0 : index
    %0 = vector.load %arg1[%c0, %c0_0] : memref<8x32xf32, #tpu.memory_space<vmem>>, vector<8x32xf32>
    %c0_1 = arith.constant 0 : index
    %c0_2 = arith.constant 0 : index
    %1 = vector.load %arg2[%c0_1, %c0_2] : memref<8x32xf32, #tpu.memory_space<vmem>>, vector<8x32xf32>
    %c0_3 = arith.constant 0 : index
    %c0_4 = arith.constant 0 : index
    %2 = vector.load %arg3[%c0_3, %c0_4] : memref<8x32xf32, #tpu.memory_space<vmem>>, vector<8x32xf32>
    %3 = tpu.concatenate %0, %1, %2 in 0 : vector<8x32xf32>, vector<8x32xf32>, vector<8x32xf32> -> vector<24x32xf32>
    %c0_5 = arith.constant 0 : index
    %c0_6 = arith.constant 0 : index
    %4 = vector.load %arg4[%c0_5, %c0_6] : memref<32x128xf32, #tpu.memory_space<vmem>>, vector<32x128xf32>
    %c0_7 = arith.constant 0 : index
    %c0_8 = arith.constant 0 : index
    %5 = vector.load %arg5[%c0_7, %c0_8] : memref<1x128xf32, #tpu.memory_space<vmem>>, vector<1x128xf32>
    %c0_9 = arith.constant 0 : index
    %c0_10 = arith.constant 0 : index
    %6 = vector.load %arg6[%c0_9, %c0_10] : memref<128x128xf32, #tpu.memory_space<vmem>>, vector<128x128xf32>
    %c0_11 = arith.constant 0 : index
    %c0_12 = arith.constant 0 : index
    %7 = vector.load %arg7[%c0_11, %c0_12] : memref<1x128xf32, #tpu.memory_space<vmem>>, vector<1x128xf32>
    %8 = arith.truncf %3 : vector<24x32xf32> to vector<24x32xbf16>
    %9 = arith.truncf %4 : vector<32x128xf32> to vector<32x128xbf16>
    %cst = arith.constant dense<0.000000e+00> : vector<24x128xf32>
    %10 = tpu.matmul %8, %9, %cst {dimension_numbers = #tpu.dot_dimension_numbers<[1], [0], [0], [1], [0, 0, 1, 1], [], []>} : vector<24x32xbf16>, vector<32x128xbf16>, vector<24x128xf32> -> vector<24x128xf32>
    %11 = vector.broadcast %5 : vector<1x128xf32> to vector<24x128xf32>
    %12 = arith.addf %10, %11 : vector<24x128xf32>
    %cst_13 = arith.constant 0.000000e+00 : f32
    %13 = vector.broadcast %cst_13 : f32 to vector<24x128xf32>
    %14 = arith.maximumf %12, %13 : vector<24x128xf32>
    %15 = arith.truncf %14 : vector<24x128xf32> to vector<24x128xbf16>
    %16 = arith.truncf %6 : vector<128x128xf32> to vector<128x128xbf16>
    %cst_14 = arith.constant dense<0.000000e+00> : vector<24x128xf32>
    %17 = tpu.matmul %15, %16, %cst_14 {dimension_numbers = #tpu.dot_dimension_numbers<[1], [0], [0], [1], [0, 0, 1, 1], [], []>} : vector<24x128xbf16>, vector<128x128xbf16>, vector<24x128xf32> -> vector<24x128xf32>
    %18 = vector.broadcast %7 : vector<1x128xf32> to vector<24x128xf32>
    %19 = arith.addf %17, %18 : vector<24x128xf32>
    %20 = vector.extract_strided_slice %19 {offsets = [0, 0], sizes = [8, 128], strides = [1, 1]} : vector<24x128xf32> to vector<8x128xf32>
    %c0_15 = arith.constant 0 : index
    %c0_16 = arith.constant 0 : index
    %21 = vector.load %arg8[%c0_15, %c0_16] : memref<8x128xf32, #tpu.memory_space<vmem>>, vector<8x128xf32>
    tpu.vector_store %arg8[%c0_15, %c0_16], %20 {strides = array<i32>} : memref<8x128xf32, #tpu.memory_space<vmem>>, vector<8x128xf32>,
    %22 = vector.extract_strided_slice %19 {offsets = [8, 0], sizes = [8, 128], strides = [1, 1]} : vector<24x128xf32> to vector<8x128xf32>
    %c0_17 = arith.constant 0 : index
    %c0_18 = arith.constant 0 : index
    %23 = vector.load %arg9[%c0_17, %c0_18] : memref<8x128xf32, #tpu.memory_space<vmem>>, vector<8x128xf32>
    tpu.vector_store %arg9[%c0_17, %c0_18], %22 {strides = array<i32>} : memref<8x128xf32, #tpu.memory_space<vmem>>, vector<8x128xf32>,
    %24 = vector.extract_strided_slice %19 {offsets = [16, 0], sizes = [8, 128], strides = [1, 1]} : vector<24x128xf32> to vector<8x128xf32>
    %c0_19 = arith.constant 0 : index
    %c0_20 = arith.constant 0 : index
    %25 = vector.load %arg10[%c0_19, %c0_20] : memref<8x128xf32, #tpu.memory_space<vmem>>, vector<8x128xf32>
    tpu.vector_store %arg10[%c0_19, %c0_20], %24 {strides = array<i32>} : memref<8x128xf32, #tpu.memory_space<vmem>>, vector<8x128xf32>,
    return
  }
  func.func @transform_0(%arg0: i32) -> (i32, i32) {
    %c0_i32 = arith.constant 0 : i32
    %c0_i32_0 = arith.constant 0 : i32
    %c0_i32_1 = arith.constant 0 : i32
    return %c0_i32, %c0_i32_0 : i32, i32
  }
  func.func @transform_1(%arg0: i32) -> (i32, i32) {
    %c0_i32 = arith.constant 0 : i32
    %c0_i32_0 = arith.constant 0 : i32
    %c0_i32_1 = arith.constant 0 : i32
    return %c0_i32, %c0_i32_0 : i32, i32
  }
  func.func @transform_2(%arg0: i32) -> (i32, i32) {
    %c0_i32 = arith.constant 0 : i32
    %c0_i32_0 = arith.constant 0 : i32
    %c0_i32_1 = arith.constant 0 : i32
    return %c0_i32, %c0_i32_0 : i32, i32
  }
  func.func @transform_3(%arg0: i32) -> (i32, i32) {
    %c0_i32 = arith.constant 0 : i32
    %c0_i32_0 = arith.constant 0 : i32
    %c0_i32_1 = arith.constant 0 : i32
    return %c0_i32, %c0_i32_0 : i32, i32
  }
  func.func @transform_4(%arg0: i32) -> (i32, i32) {
    %c0_i32 = arith.constant 0 : i32
    %c0_i32_0 = arith.constant 0 : i32
    %c0_i32_1 = arith.constant 0 : i32
    return %c0_i32, %c0_i32_0 : i32, i32
  }
  func.func @transform_5(%arg0: i32) -> (i32, i32) {
    %c0_i32 = arith.constant 0 : i32
    %c0_i32_0 = arith.constant 0 : i32
    %c0_i32_1 = arith.constant 0 : i32
    return %c0_i32, %c0_i32_0 : i32, i32
  }
  func.func @transform_6(%arg0: i32) -> (i32, i32) {
    %c0_i32 = arith.constant 0 : i32
    %c0_i32_0 = arith.constant 0 : i32
    %c0_i32_1 = arith.constant 0 : i32
    return %c0_i32, %c0_i32_0 : i32, i32
  }
  func.func @transform_7(%arg0: i32) -> (i32, i32) {
    %c0_i32 = arith.constant 0 : i32
    %c0_i32_0 = arith.constant 0 : i32
    %c0_i32_1 = arith.constant 0 : i32
    return %c0_i32, %c0_i32_0 : i32, i32
  }
  func.func @transform_8(%arg0: i32) -> (i32, i32) {
    %c0_i32 = arith.constant 0 : i32
    %c0_i32_0 = arith.constant 0 : i32
    %c0_i32_1 = arith.constant 0 : i32
    return %c0_i32, %c0_i32_0 : i32, i32
  }
  func.func @transform_9(%arg0: i32) -> (i32, i32) {
    %c0_i32 = arith.constant 0 : i32
    %c0_i32_0 = arith.constant 0 : i32
    %c0_i32_1 = arith.constant 0 : i32
    return %c0_i32, %c0_i32_0 : i32, i32
  }
}

</mosaic_0001>

<bundles_post_ra>
// kernel: tpu_custom_call.1
= control target key start
LH: loop header
LB: loop body
LE: loop exit
PB: predicated region body
PF: predicated region fallthrough
CT: control target
= control target key end

     0   :  { %15 = vsyncpa [#allocation3], 0  ;;  %s562_s0 = inlined_call_operand.hbm [shape: f32[8,32], index: 0, kind: input, shape index: {}]   ;;  %s563_s1 = inlined_call_operand.hbm [shape: f32[8,32], index: 1, kind: input, shape index: {}]   ;;  %s564_s2 = inlined_call_operand.hbm [shape: f32[8,32], index: 2, kind: input, shape index: {}]   ;;  %s565_s3 = inlined_call_operand.hbm [shape: f32[32,128], index: 3, kind: input, shape index: {}]   ;;  %s566_s4 = inlined_call_operand.vmem [shape: f32[1,128], index: 4, kind: input, shape index: {}]   ;;  %s567_s5 = inlined_call_operand.hbm [shape: f32[128,128], index: 5, kind: input, shape index: {}]   ;;  %s568_s6 = inlined_call_operand.vmem [shape: f32[1,128], index: 6, kind: input, shape index: {}]   ;;  %s569_s7 = inlined_call_operand.hbm [shape: f32[8,128], index: 7, kind: output, shape index: {0}]   ;;  %s570_s8 = inlined_call_operand.hbm [shape: f32[8,128], index: 8, kind: output, shape index: {1}]   ;;  %s571_s9 = inlined_call_operand.hbm [shape: f32[8,128], index: 9, kind: output, shape index: {2}]  }
   0x1   :  { %16 = vsyncpa [#allocation6], 0 }
   0x2   :  { %17 = vsyncpa [#allocation9], 0 }
   0x3   :  { %18 = vsyncpa [#allocation4], 0  ;;  %s36_s11 = sshll.u32 %s563_s1, 4  ;;  %s37_s11 = int_to_ptr.hbm [resolvable:$true] %s36_s11 }
   0x4   :  { %19 = vsyncpa [#allocation13], 0  ;;  %s472_s12 = smov [#allocation5]   ;;  %s57_s16 = sshll.u32 %s565_s3, 4  ;;  %s58_s16 = int_to_ptr.hbm [resolvable:$true] %s57_s16 }
   0x5   :  { %s38_s13 = sshll.u32 %s472_s12, 4  ;;  %s473_s17 = smov [#allocation8]   ;;  %s39_s13 = int_to_ptr.vmem [resolvable:$true] %s38_s13 }
   0x6   :  { %41 = dma.hbm_to_vmem [thread:$0]  %s37_s11, 128, %s39_s13, [#allocation6]  }
   0x7   :  { %s59_s18 = sshll.u32 %s473_s17, 4  ;;  %s474_s19 = smov 128   ;;  %s60_s18 = int_to_ptr.vmem [resolvable:$true] %s59_s18 }
   0x8   :  { %s475_s20 = smov 8   ;;  %s25_s1 = sshll.u32 %s562_s0, 4  ;;  %s26_s1 = int_to_ptr.hbm [resolvable:$true] %s25_s1 }
   0x9   :  { %65 = dma.hbm_to_vmem [thread:$0]  %s58_s16, 512, %s60_s18, [#allocation9], %s474_s19, %s474_s19, %s475_s20  }
   0xa   :  { %s476_s23 = smov [#allocation2]   ;;  %s47_s3 = sshll.u32 %s564_s2, 4  ;;  %s48_s3 = int_to_ptr.hbm [resolvable:$true] %s47_s3 }
   0xb   :  { %s27_s24 = sshll.u32 %s476_s23, 4  ;;  %s477_s27 = smov [#allocation7]   ;;  %s28_s24 = int_to_ptr.vmem [resolvable:$true] %s27_s24 }
   0xc   :  { %30 = dma.hbm_to_vmem [thread:$0]  %s26_s1, 128, %s28_s24, [#allocation3]  }
   0xd   :  { %s49_s28 = sshll.u32 %s477_s27, 4  ;;  %s72_s10 = sshll.u32 %s567_s5, 4  ;;  %s50_s28 = int_to_ptr.vmem [resolvable:$true] %s49_s28  ;;  %s73_s10 = int_to_ptr.hbm [resolvable:$true] %s72_s10 }
   0xe   :  { %52 = dma.hbm_to_vmem [thread:$0]  %s48_s3, 128, %s50_s28, [#allocation6]  }
   0xf   :  { %s478_s0 = smov [#allocation10]  }
  0x10   :  { %s74_s11 = sshll.u32 %s478_s0, 4  ;;  %s75_s11 = int_to_ptr.vmem [resolvable:$true] %s74_s11 }
  0x11   :  { %80 = dma.hbm_to_vmem [thread:$0]  %s73_s10, 2048, %s75_s11, [#allocation9], %s474_s19, %s474_s19, %s475_s20  }
  0x12   :  { %462 = dma.done.wait [#allocation3], 128  }
  0x13   :  { %463 = vsyncadd [#allocation3], 4294967168 }
  0x14   :  { %464 = dma.done.wait [#allocation6], 256  }
  0x15   :  { %465 = vsyncadd [#allocation6], 4294967040 }
  0x16   :  { %466 = dma.done.wait [#allocation9], 2560  }
  0x17   :  { %467 = vsyncadd [#allocation9], 4294964736  ;;  %v109_v0 = vld [vmem:[#allocation8 + $0x10] sm:$0xff]  ;;  %v110_v1 = vld [vmem:[#allocation8 + $0x18] sm:$0xff]  ;;  %vm136_vm0 = vcmask 261120   ;;  %s479_s14 = smov [#allocation11]  }
  0x18   :  { %v107_v2 = vld [vmem:[#allocation8] sm:$0xff]  ;;  %v132_v3 = vpack.c.bf16 %v110_v1, %v109_v0  ;;  %v108_v4 = vld [vmem:[#allocation8 + $0x8] sm:$0xff]  ;;  %v126_v6 = vld [vmem:[#allocation10 + $0x70] sm:$0xff]  ;;  %s203_s15 = sshll.u32 %s479_s14, 4  ;;  %s205_s17 = sshll.u32 %s569_s7, 4  ;;  %s204_s15 = int_to_ptr.vmem [resolvable:$true] %s203_s15  ;;  %s206_s17 = int_to_ptr.hbm [resolvable:$true] %s205_s17 }
  0x19   :  { %v104_v5 = vld [vmem:[#allocation2] sm:$0xff]  ;;  %v127_v7 = vld [vmem:[#allocation10 + $0x78] sm:$0xff]  ;;  %v131_v8 = vpack.c.bf16 %v108_v4, %v107_v2  ;;  %v105_v9 = vld [vmem:[#allocation5] sm:$0xff]  ;;  %s480_s18 = smov [#allocation12]   ;;  %s216_s22 = sshll.u32 %s570_s8, 4  ;;  %s217_s22 = int_to_ptr.hbm [resolvable:$true] %s216_s22 }
  0x1a   :  { %149 = vmatpush.bf16.msra.mxu0 %v132_v3  ;;  %v173_v10 = vpack.c.bf16 %v127_v7, %v126_v6  ;;  %v124_v11 = vld [vmem:[#allocation10 + $0x60] sm:$0xff]  ;;  %v125_v12 = vld [vmem:[#allocation10 + $0x68] sm:$0xff]  ;;  %v129_v14 = vpack.c.bf16 %v105_v9, %v104_v5  ;;  %v122_v15 = vld [vmem:[#allocation10 + $0x50] sm:$0xff]  ;;  %s214_s19 = sshll.u32 %s480_s18, 4  ;;  %s227_s24 = sshll.u32 %s571_s9, 4  ;;  %s215_s19 = int_to_ptr.vmem [resolvable:$true] %s214_s19  ;;  %s228_s24 = int_to_ptr.hbm [resolvable:$true] %s227_s24 }
  0x1b   :  { %v172_v13 = vpack.c.bf16 %v125_v12, %v124_v11  ;;  %v123_v16 = vld [vmem:[#allocation10 + $0x58] sm:$0xff]  ;;  %v120_v18 = vld [vmem:[#allocation10 + $0x40] sm:$0xff]  ;;  %v121_v19 = vld [vmem:[#allocation10 + $0x48] sm:$0xff] }
  0x1c   :  { %177 = vmatpush.bf16.msra.mxu1 %v173_v10  ;;  %250 = vmatpush.bf16.msra.mxu2 %v173_v10  ;;  %v171_v17 = vpack.c.bf16 %v123_v16, %v122_v15  ;;  %v170_v20 = vpack.c.bf16 %v121_v19, %v120_v18  ;;  %v106_v21 = vld [vmem:[#allocation7] sm:$0xff]  ;;  %v118_v23 = vld [vmem:[#allocation10 + $0x30] sm:$0xff]  ;;  %v116_v26 = vld [vmem:[#allocation10 + $0x20] sm:$0xff] }
  0x1d   :  { %v130_v22 = vpack.c.bf16 %v106_v21, %v106_v21  ;;  %v119_v24 = vld [vmem:[#allocation10 + $0x38] sm:$0xff]  ;;  %v117_v27 = vld [vmem:[#allocation10 + $0x28] sm:$0xff]  ;;  %v114_v29 = vld [vmem:[#allocation10 + $0x10] sm:$0xff] }
  0x1e   :  { %150 = vmatpush.bf16.msra.mxu0 %v131_v8  ;;  %v169_v25 = vpack.c.bf16 %v119_v24, %v118_v23  ;;  %v168_v28 = vpack.c.bf16 %v117_v27, %v116_v26  ;;  %v115_v30 = vld [vmem:[#allocation10 + $0x18] sm:$0xff]  ;;  %v112_v32 = vld [vmem:[#allocation10] sm:$0xff]  ;;  %v113_v33 = vld [vmem:[#allocation10 + $0x8] sm:$0xff] }
  0x1f   :  { %v167_v31 = vpack.c.bf16 %v115_v30, %v114_v29  ;;  %v166_v34 = vpack.c.bf16 %v113_v33, %v112_v32  ;;  %v268_v36 = vld [vmem:[%s566_s4] ss:$0 sm:$0xff] }
  0x20   :  { %178 = vmatpush.bf16.msra.mxu1 %v172_v13  ;;  %251 = vmatpush.bf16.msra.mxu2 %v172_v13  ;;  %v269_v48 = vld [vmem:[%s568_s6] ss:$0 sm:$0xff]  ;;  %s481_s6 = smov [#allocation14]  }
  0x21   :  { %248 = vmatmul.msk.bf16.vlgmr.msra.gmra.mxu0 %vm136_vm0, %v129_v14  ;;  %s225_s1 = sshll.u32 %s481_s6, 4  ;;  %s226_s1 = int_to_ptr.vmem [resolvable:$true] %s225_s1 }
  0x24   :  { %179 = vmatpush.bf16.msra.mxu1 %v171_v17  ;;  %252 = vmatpush.bf16.msra.mxu2 %v171_v17 }
  0x28   :  { %180 = vmatpush.bf16.msra.mxu1 %v170_v20  ;;  %253 = vmatpush.bf16.msra.mxu2 %v170_v20 }
  0x2c   :  { %181 = vmatpush.bf16.msra.mxu1 %v169_v25  ;;  %254 = vmatpush.bf16.msra.mxu2 %v169_v25 }
  0x30   :  { %182 = vmatpush.bf16.msra.mxu1 %v168_v28  ;;  %255 = vmatpush.bf16.msra.mxu2 %v168_v28 }
  0x31   :  { %249 = vmatmul.msk.bf16.gmra.mxu0 %vm136_vm0, %v130_v22 }
  0x34   :  { %183 = vmatpush.bf16.msra.mxu1 %v167_v31  ;;  %256 = vmatpush.bf16.msra.mxu2 %v167_v31 }
  0x38   :  { %184 = vmatpush.bf16.msra.mxu1 %v166_v34  ;;  %257 = vmatpush.bf16.msra.mxu2 %v166_v34 }
  0x9e   :  { %v152_v35 = vpop.f32.mrf.mxu0 }
  0x9f   :  { %v153_v37 = vadd.f32 %v268_v36, %v152_v35 }
  0xa1   :  { %v161_v40 = vmax.f32 %v153_v37, 0.0 }
  0xa6   :  { %v154_v38 = vpop.f32.mrf.mxu0 }
  0xa7   :  { %v155_v39 = vadd.f32 %v268_v36, %v154_v38 }
  0xa9   :  { %v162_v41 = vmax.f32 %v155_v39, 0.0 }
  0xab   :  { %v164_v42 = vpack.c.bf16 %v162_v41, %v161_v40 }
  0xad   :  { %185 = vmatmul.bf16.vlgmr.msra.gmra.mxu1 %v164_v42 }
  0xae   :  { %v157_v43 = vpop.f32.mrf.mxu0 }
  0xaf   :  { %v158_v44 = vadd.f32 %v268_v36, %v157_v43 }
  0xb1   :  { %v163_v45 = vmax.f32 %v158_v44, 0.0 }
  0xb3   :  { %v165_v46 = vpack.c.bf16 %v163_v45, %v163_v45 }
  0xb5   :  { %190 = vmatmul.bf16.vlgmr.msra.gmra.mxu2 %v165_v46 }
  0xb6   :  { %v159_v47 = vpop.f32.mrf.mxu0 }
 0x12a   :  { %v186_v49 = vpop.f32.mrf.mxu1 }
 0x12b   :  { %v187_v50 = vadd.f32 %v269_v48, %v186_v49 }
 0x12d   :  { %195 = vst [vmem:[#allocation11] sm:$0xff] %v187_v50 }
 0x12e   :  { %208 = dma.vmem_to_hbm [thread:$0]  %s204_s15, 128, %s206_s17, [#allocation4]  }
 0x132   :  { %v188_v51 = vpop.f32.mrf.mxu1 }
 0x133   :  { %v189_v52 = vadd.f32 %v269_v48, %v188_v51 }
 0x135   :  { %196 = vst [vmem:[#allocation12] sm:$0xff] %v189_v52 }
 0x136   :  { %219 = dma.vmem_to_hbm [thread:$0]  %s215_s19, 128, %s217_s22, [#allocation13]  }
 0x138   :  { %v191_v53 = vpop.f32.mrf.mxu2 }
 0x139   :  { %v192_v54 = vadd.f32 %v269_v48, %v191_v53 }
 0x13b   :  { %197 = vst [vmem:[#allocation14] sm:$0xff] %v192_v54 }
 0x13c   :  { %230 = dma.vmem_to_hbm [thread:$0]  %s226_s1, 128, %s228_s24, [#allocation13]  }
 0x140   :  { %v193_v55 = vpop.f32.mrf.mxu2 }
 0x141   :  { %468 = dma.done.wait [#allocation4], 128  }
 0x142   :  { %469 = vsyncadd [#allocation4], 4294967168 }
 0x143   :  { %470 = dma.done.wait [#allocation13], 256  }
 0x144   :  { %471 = vsyncadd [#allocation13], 4294967040 }
 0x145   :  { %243 = vsyncpa [#allocation3], 1 }
 0x146   :  { %244 = vsyncpa [#allocation6], 1 }
 0x147   :  { %245 = vsyncpa [#allocation9], 1 }
 0x148   :  { %246 = vsyncpa [#allocation4], 1 }
 0x149   :  { %247 = vsyncpa [#allocation13], 1 }

</bundles_post_ra>
